<compile_context>
chip_gen: v7x
topology: tpu7x:2x2x1
jax: 0.10.0
libtpu: 0.0.40
codegen_flags: <defaults>
</compile_context>

<pallas_src>
import functools

import jax
import jax.numpy as jnp
from jax.experimental import pallas as pl
from jax.experimental.pallas import tpu as pltpu

LANES = 128
MAX_BLOCK_ROWS = 8192   # 8192*128*4 B = 4 MiB per f32 input block


def _silog_partial_kernel(est_ref, gt_ref, mask_ref, acc_ref, *,
                          rows, n_blocks, n_inner, block_rows, tail_check):
    c = pl.program_id(0)          # TensorCore split ("parallel")
    i = pl.program_id(1)          # reduction over row blocks ("arbitrary")

    @pl.when(i == 0)
    def _():
        acc_ref[...] = jnp.zeros_like(acc_ref)

    blk = c * n_inner + i         # logical block id

    # Clamped duplicate blocks (odd n_blocks with the 2-way split) skip all work.
    @pl.when(blk < n_blocks)
    def _():
        valid = mask_ref[...] != 0
        if tail_check:
            # Only compiled in when the last block overruns the padded array:
            # exclude whole rows past `rows` (mask bytes there are undefined).
            row0 = blk * block_rows
            row_iota = jax.lax.broadcasted_iota(
                jnp.int32, (block_rows, LANES), 0)
            valid = valid & ((row0 + row_iota) < rows)

        est = est_ref[...].astype(jnp.float32)
        gt = gt_ref[...].astype(jnp.float32)
        # Two logs (EUP slot) instead of an exact f32 divide (VALU);
        # jnp.where discards the NaN/Inf from masked / padded elements.
        d = jnp.where(valid, jnp.log(est) - jnp.log(gt), 0.0)
        cnt = valid.astype(jnp.float32)

        # Fold the (block_rows, 128) tile into the resident (8, 128) accumulators
        # with elementwise VPU adds; cross-lane work is deferred to the wrapper.
        nf = block_rows // 8
        d_f = d.reshape(nf, 8, LANES)
        acc_ref[0, 0] += jnp.sum(d_f, axis=0)                       # sum(d)
        acc_ref[0, 1] += jnp.sum(d_f * d_f, axis=0)                 # sum(d^2)
        acc_ref[0, 2] += jnp.sum(cnt.reshape(nf, 8, LANES), axis=0)  # count


def silog_loss_pallas(depth_est, depth_gt, mask, variance_focus):
    """depth_est, depth_gt: float (N, C, H, W); mask: bool (N, C, H, W)."""
    est = depth_est.reshape(-1)                         # keep native dtype
    gt = depth_gt.reshape(-1)
    msk = mask.astype(jnp.int8).reshape(-1)

    n = est.shape[0]                                    # true element count (static)
    pad = (-n) % (32 * LANES)                           # rows -> multiple of 32 (int8 tiling)
    if pad:
        est = jnp.pad(est, (0, pad))
        gt = jnp.pad(gt, (0, pad))
        msk = jnp.pad(msk, (0, pad))                    # zeros => excluded in-kernel

    rows = (n + pad) // LANES                           # multiple of 32
    est2 = est.reshape(rows, LANES)
    gt2 = gt.reshape(rows, LANES)
    msk2 = msk.reshape(rows, LANES)

    # Big lane-dense blocks: the whole array when it is small, else 8192 rows.
    block_rows = rows if rows <= MAX_BLOCK_ROWS else MAX_BLOCK_ROWS
    n_blocks = pl.cdiv(rows, block_rows)
    n_split = 2 if n_blocks >= 2 else 1                 # 2-way split only if useful
    n_inner = pl.cdiv(n_blocks, n_split)
    tail_check = (rows % block_rows) != 0               # last block overruns array?

    def in_map(c, i):
        return (jnp.minimum(c * n_inner + i, n_blocks - 1), 0)

    in_spec = pl.BlockSpec((block_rows, LANES), in_map)
    out_spec = pl.BlockSpec((1, 3, 8, LANES), lambda c, i: (c, 0, 0, 0))

    kernel = functools.partial(
        _silog_partial_kernel,
        rows=rows, n_blocks=n_blocks, n_inner=n_inner,
        block_rows=block_rows, tail_check=tail_check)

    n_elems = rows * LANES
    bytes_per_elem = est2.dtype.itemsize + gt2.dtype.itemsize + 1
    cost = pl.CostEstimate(
        flops=6 * n_elems,
        transcendentals=2 * n_elems,
        bytes_accessed=n_elems * bytes_per_elem)

    partials = pl.pallas_call(
        kernel,
        out_shape=jax.ShapeDtypeStruct((n_split, 3, 8, LANES), jnp.float32),
        grid_spec=pltpu.PrefetchScalarGridSpec(
            num_scalar_prefetch=0,
            grid=(n_split, n_inner),
            in_specs=[in_spec, in_spec, in_spec],
            out_specs=out_spec,
        ),
        compiler_params=pltpu.CompilerParams(
            dimension_semantics=("parallel", "arbitrary"),
            vmem_limit_bytes=32 * 1024 * 1024),
        cost_estimate=cost,
    )(est2, gt2, msk2)

    # Single cross-lane reduction + scalar epilogue in the wrapper.
    sums = jnp.sum(partials, axis=(0, 2, 3))            # (sum d, sum d^2, count)
    cnt = sums[2]                                       # NaN if mask all-false, as in ref
    mean_d = sums[0] / cnt
    mean_d2 = sums[1] / cnt
    # Clamp: fp rounding can make the variance term slightly negative.
    var_term = jnp.maximum(mean_d2 - variance_focus * mean_d * mean_d, 0.0)
    return jnp.sqrt(var_term) * 10.0


def silog_loss_ref(depth_est, depth_gt, mask, variance_focus):
    m = mask.astype(jnp.float32)
    cnt = jnp.sum(m)
    d = (jnp.log(jnp.where(mask, depth_est, 1.0))
         - jnp.log(jnp.where(mask, depth_gt, 1.0))) * m
    mean_d = jnp.sum(d) / cnt
    mean_d2 = jnp.sum(d * d) / cnt
    return jnp.sqrt(mean_d2 - variance_focus * mean_d ** 2) * 10.0


if __name__ == "__main__":
    key = jax.random.PRNGKey(0)
    k1, k2, k3 = jax.random.split(key, 3)

    N, C, H, W = 2, 4, 16, 16
    depth_est = jax.random.uniform(k1, (N, C, H, W), jnp.float32, 0.1, 10.0)
    depth_gt = jax.random.uniform(k2, (N, C, H, W), jnp.float32, 0.1, 10.0)
    mask = jax.random.uniform(k3, (N, C, H, W), jnp.float32) > 0.3

    variance_focus = 0.85

    loss = silog_loss_pallas(depth_est, depth_gt, mask, variance_focus)
    loss = jax.block_until_ready(loss)

    ref = silog_loss_ref(depth_est, depth_gt, mask, variance_focus)
    assert jnp.allclose(loss, ref, rtol=1e-4, atol=1e-4), (loss, ref)

    print("KERNEL_OK")
</pallas_src>

<mosaic_0001>
module attributes {stable_mosaic.version = 11 : i64} {
  func.func @_silog_partial_kernel(%arg0: i32, %arg1: i32, %arg2: memref<32x128xf32, #tpu.memory_space<vmem>>, %arg3: memref<32x128xf32, #tpu.memory_space<vmem>>, %arg4: memref<32x128xi8, #tpu.memory_space<vmem>>, %arg5: memref<1x3x8x128xf32, #tpu.memory_space<vmem>>) attributes {dimension_semantics = [#tpu.dimension_semantics<parallel>, #tpu.dimension_semantics<arbitrary>], iteration_bounds = array<i64: 1, 1>, scalar_prefetch = 0 : i64, scratch_operands = 0 : i64, tpu.core_type = #tpu.core_type<tc>, window_params = [{transform_indices = @transform_0, window_bounds = array<i64: 32, 128>}, {transform_indices = @transform_1, window_bounds = array<i64: 32, 128>}, {transform_indices = @transform_2, window_bounds = array<i64: 32, 128>}, {transform_indices = @transform_3, window_bounds = array<i64: 1, 3, 8, 128>}]} {
    %c0_i32 = arith.constant 0 : i32
    %0 = arith.cmpi eq, %arg1, %c0_i32 : i32
    %1 = arith.extui %0 : i1 to i32
    %c0_i32_0 = arith.constant 0 : i32
    %2 = arith.cmpi ne, %1, %c0_i32_0 : i32
    scf.if %2 {
      %cst = arith.constant 0.000000e+00 : f32
      %8 = vector.broadcast %cst : f32 to vector<1x3x8x128xf32>
      %c0 = arith.constant 0 : index
      %c0_3 = arith.constant 0 : index
      %c0_4 = arith.constant 0 : index
      %c0_5 = arith.constant 0 : index
      %9 = vector.load %arg5[%c0, %c0_3, %c0_4, %c0_5] : memref<1x3x8x128xf32, #tpu.memory_space<vmem>>, vector<1x3x8x128xf32>
      tpu.vector_store %arg5[%c0, %c0_3, %c0_4, %c0_5], %8 {strides = array<i32>} : memref<1x3x8x128xf32, #tpu.memory_space<vmem>>, vector<1x3x8x128xf32>,
    } else {
    }
    %c1_i32 = arith.constant 1 : i32
    %3 = arith.muli %arg0, %c1_i32 : i32
    %4 = arith.addi %3, %arg1 : i32
    %c1_i32_1 = arith.constant 1 : i32
    %5 = arith.cmpi slt, %4, %c1_i32_1 : i32
    %6 = arith.extui %5 : i1 to i32
    %c0_i32_2 = arith.constant 0 : i32
    %7 = arith.cmpi ne, %6, %c0_i32_2 : i32
    scf.if %7 {
      %c0 = arith.constant 0 : index
      %c0_3 = arith.constant 0 : index
      %8 = vector.load %arg4[%c0, %c0_3] : memref<32x128xi8, #tpu.memory_space<vmem>>, vector<32x128xi8>
      %c0_i8 = arith.constant 0 : i8
      %9 = vector.broadcast %c0_i8 : i8 to vector<32x128xi8>
      %10 = arith.cmpi ne, %8, %9 : vector<32x128xi8>
      %c0_4 = arith.constant 0 : index
      %c0_5 = arith.constant 0 : index
      %11 = vector.load %arg2[%c0_4, %c0_5] : memref<32x128xf32, #tpu.memory_space<vmem>>, vector<32x128xf32>
      %c0_6 = arith.constant 0 : index
      %c0_7 = arith.constant 0 : index
      %12 = vector.load %arg3[%c0_6, %c0_7] : memref<32x128xf32, #tpu.memory_space<vmem>>, vector<32x128xf32>
      %13 = math.log %11 : vector<32x128xf32>
      %14 = math.log %12 : vector<32x128xf32>
      %15 = arith.subf %13, %14 : vector<32x128xf32>
      %cst = arith.constant 0.000000e+00 : f32
      %16 = vector.broadcast %cst : f32 to vector<32x128xf32>
      %17 = arith.select %10, %15, %16 : vector<32x128xi1>, vector<32x128xf32>
      %18 = arith.extui %10 : vector<32x128xi1> to vector<32x128xi32>
      %19 = arith.sitofp %18 : vector<32x128xi32> to vector<32x128xf32>
      %20 = vector.shape_cast %17 : vector<32x128xf32> to vector<4x8x128xf32>
      %c0_8 = arith.constant 0 : index
      %c0_9 = arith.constant 0 : index
      %c0_10 = arith.constant 0 : index
      %c0_11 = arith.constant 0 : index
      %21 = vector.load %arg5[%c0_8, %c0_9, %c0_10, %c0_11] : memref<1x3x8x128xf32, #tpu.memory_space<vmem>>, vector<1x1x8x128xf32>
      %22 = vector.shape_cast %21 : vector<1x1x8x128xf32> to vector<8x128xf32>
      %cst_12 = arith.constant dense<0.000000e+00> : vector<8x128xf32>
      %23 = vector.multi_reduction <add>, %20, %cst_12 [0] : vector<4x8x128xf32> to vector<8x128xf32>
      %24 = arith.addf %22, %23 : vector<8x128xf32>
      %c0_13 = arith.constant 0 : index
      %c0_14 = arith.constant 0 : index
      %c0_15 = arith.constant 0 : index
      %c0_16 = arith.constant 0 : index
      %25 = vector.load %arg5[%c0_13, %c0_14, %c0_15, %c0_16] : memref<1x3x8x128xf32, #tpu.memory_space<vmem>>, vector<1x1x8x128xf32>
      %26 = vector.shape_cast %25 : vector<1x1x8x128xf32> to vector<8x128xf32>
      %27 = vector.shape_cast %24 : vector<8x128xf32> to vector<1x1x8x128xf32>
      tpu.vector_store %arg5[%c0_13, %c0_14, %c0_15, %c0_16], %27 {strides = array<i32>} : memref<1x3x8x128xf32, #tpu.memory_space<vmem>>, vector<1x1x8x128xf32>,
      %c0_17 = arith.constant 0 : index
      %c1 = arith.constant 1 : index
      %c0_18 = arith.constant 0 : index
      %c0_19 = arith.constant 0 : index
      %28 = vector.load %arg5[%c0_17, %c1, %c0_18, %c0_19] : memref<1x3x8x128xf32, #tpu.memory_space<vmem>>, vector<1x1x8x128xf32>
      %29 = vector.shape_cast %28 : vector<1x1x8x128xf32> to vector<8x128xf32>
      %30 = arith.mulf %20, %20 : vector<4x8x128xf32>
      %cst_20 = arith.constant dense<0.000000e+00> : vector<8x128xf32>
      %31 = vector.multi_reduction <add>, %30, %cst_20 [0] : vector<4x8x128xf32> to vector<8x128xf32>
      %32 = arith.addf %29, %31 : vector<8x128xf32>
      %c0_21 = arith.constant 0 : index
      %c1_22 = arith.constant 1 : index
      %c0_23 = arith.constant 0 : index
      %c0_24 = arith.constant 0 : index
      %33 = vector.load %arg5[%c0_21, %c1_22, %c0_23, %c0_24] : memref<1x3x8x128xf32, #tpu.memory_space<vmem>>, vector<1x1x8x128xf32>
      %34 = vector.shape_cast %33 : vector<1x1x8x128xf32> to vector<8x128xf32>
      %35 = vector.shape_cast %32 : vector<8x128xf32> to vector<1x1x8x128xf32>
      tpu.vector_store %arg5[%c0_21, %c1_22, %c0_23, %c0_24], %35 {strides = array<i32>} : memref<1x3x8x128xf32, #tpu.memory_space<vmem>>, vector<1x1x8x128xf32>,
      %c0_25 = arith.constant 0 : index
      %c2 = arith.constant 2 : index
      %c0_26 = arith.constant 0 : index
      %c0_27 = arith.constant 0 : index
      %36 = vector.load %arg5[%c0_25, %c2, %c0_26, %c0_27] : memref<1x3x8x128xf32, #tpu.memory_space<vmem>>, vector<1x1x8x128xf32>
      %37 = vector.shape_cast %36 : vector<1x1x8x128xf32> to vector<8x128xf32>
      %38 = vector.shape_cast %19 : vector<32x128xf32> to vector<4x8x128xf32>
      %cst_28 = arith.constant dense<0.000000e+00> : vector<8x128xf32>
      %39 = vector.multi_reduction <add>, %38, %cst_28 [0] : vector<4x8x128xf32> to vector<8x128xf32>
      %40 = arith.addf %37, %39 : vector<8x128xf32>
      %c0_29 = arith.constant 0 : index
      %c2_30 = arith.constant 2 : index
      %c0_31 = arith.constant 0 : index
      %c0_32 = arith.constant 0 : index
      %41 = vector.load %arg5[%c0_29, %c2_30, %c0_31, %c0_32] : memref<1x3x8x128xf32, #tpu.memory_space<vmem>>, vector<1x1x8x128xf32>
      %42 = vector.shape_cast %41 : vector<1x1x8x128xf32> to vector<8x128xf32>
      %43 = vector.shape_cast %40 : vector<8x128xf32> to vector<1x1x8x128xf32>
      tpu.vector_store %arg5[%c0_29, %c2_30, %c0_31, %c0_32], %43 {strides = array<i32>} : memref<1x3x8x128xf32, #tpu.memory_space<vmem>>, vector<1x1x8x128xf32>,
    } else {
    }
    return
  }
  func.func @transform_0(%arg0: i32, %arg1: i32) -> (i32, i32) {
    %c1_i32 = arith.constant 1 : i32
    %0 = arith.muli %arg0, %c1_i32 : i32
    %1 = arith.addi %0, %arg1 : i32
    %c0_i32 = arith.constant 0 : i32
    %2 = arith.minsi %1, %c0_i32 : i32
    %c0_i32_0 = arith.constant 0 : i32
    %c0_i32_1 = arith.constant 0 : i32
    return %2, %c0_i32_0 : i32, i32
  }
  func.func @transform_1(%arg0: i32, %arg1: i32) -> (i32, i32) {
    %c1_i32 = arith.constant 1 : i32
    %0 = arith.muli %arg0, %c1_i32 : i32
    %1 = arith.addi %0, %arg1 : i32
    %c0_i32 = arith.constant 0 : i32
    %2 = arith.minsi %1, %c0_i32 : i32
    %c0_i32_0 = arith.constant 0 : i32
    %c0_i32_1 = arith.constant 0 : i32
    return %2, %c0_i32_0 : i32, i32
  }
  func.func @transform_2(%arg0: i32, %arg1: i32) -> (i32, i32) {
    %c1_i32 = arith.constant 1 : i32
    %0 = arith.muli %arg0, %c1_i32 : i32
    %1 = arith.addi %0, %arg1 : i32
    %c0_i32 = arith.constant 0 : i32
    %2 = arith.minsi %1, %c0_i32 : i32
    %c0_i32_0 = arith.constant 0 : i32
    %c0_i32_1 = arith.constant 0 : i32
    return %2, %c0_i32_0 : i32, i32
  }
  func.func @transform_3(%arg0: i32, %arg1: i32) -> (i32, i32, i32, i32) {
    %c0_i32 = arith.constant 0 : i32
    %c0_i32_0 = arith.constant 0 : i32
    %c0_i32_1 = arith.constant 0 : i32
    %c0_i32_2 = arith.constant 0 : i32
    return %arg0, %c0_i32, %c0_i32_0, %c0_i32_1 : i32, i32, i32, i32
  }
}

</mosaic_0001>

<bundles_post_ra>
// kernel: tpu_custom_call.1
= control target key start
LH: loop header
LB: loop body
LE: loop exit
PB: predicated region body
PF: predicated region fallthrough
CT: control target
= control target key end

     0   :  { %8 = vsyncpa [#allocation3], 0  ;;  %s461_s0 = inlined_call_operand.hbm [shape: f32[32,128], index: 0, kind: input, shape index: {}]   ;;  %s462_s1 = inlined_call_operand.hbm [shape: f32[32,128], index: 1, kind: input, shape index: {}]   ;;  %s463_s2 = inlined_call_operand.hbm [shape: s8[32,128], index: 2, kind: input, shape index: {}]   ;;  %s464_s3 = inlined_call_operand.hbm [shape: f32[1,3,8,128], index: 3, kind: output, shape index: {}]  }
   0x1   :  { %9 = vsyncpa [#allocation6], 0 }
   0x2   :  { %10 = vsyncpa [#allocation4], 0  ;;  %s337_s12 = smov [#allocation5]   ;;  %s338_s14 = smov [#allocation2]  }
   0x3   :  { %s40_s13 = sshll.u32 %s337_s12, 4  ;;  %s22_s15 = sshll.u32 %s338_s14, 4  ;;  %s41_s13 = int_to_ptr.vmem [resolvable:$true] %s40_s13  ;;  %s365_s15 = int_to_ptr.vmem [resolvable:$true] %s22_s15 }
   0x4   :  { %s243_s18 = scalar_lea.hbm %s462_s1, 512 }
   0x5   :  { %p244_p0 = scmp.ne.s32.totalorder %s462_s1, %s243_s18  ;;  %p247_p1 = scmp.lt.u32.totalorder %s243_s18, %s462_s1 }
   0x7   :  { %p249_p2 = pnand %p247_p1, %p244_p0 }
   0x9   :  { %252 = shalt.err (!%p249_p2)
}
   0xa   :  { %s253_s23 = scalar_lea.vmem %s41_s13, 512  ;;  %p258_p4 = scmp.lt.s32.totalorder %s41_s13, %s41_s13 }
   0xb   :  { %p254_p3 = scmp.ne.s32.totalorder %s41_s13, %s253_s23  ;;  %p259_p5 = scmp.lt.s32.totalorder %s253_s23, %s253_s23 }
   0xd   :  { %p260_p6 = por %p259_p5, %p258_p4 }
   0xf   :  { %p261_p7 = pnand %p260_p6, %p254_p3 }
  0x11   :  { %264 = shalt.err (!%p261_p7)
}
  0x12   :  { %s339_s24 = smov 128   ;;  %s340_s25 = smov 8  }
  0x13   :  { %46 = dma.hbm_to_vmem [thread:$0]  %s462_s1, 512, %s41_s13, [#allocation6], %s339_s24, %s339_s24, %s340_s25  }
  0x14   :  { %s265_s30 = scalar_lea.hbm %s461_s0, 512 }
  0x15   :  { %p266_p8 = scmp.ne.s32.totalorder %s461_s0, %s265_s30  ;;  %p269_p9 = scmp.lt.u32.totalorder %s265_s30, %s461_s0 }
  0x17   :  { %p271_p10 = pnand %p269_p9, %p266_p8 }
  0x19   :  { %274 = shalt.err (!%p271_p10)
}
  0x1a   :  { %s275_s8 = scalar_lea.vmem %s365_s15, 512  ;;  %p280_p12 = scmp.lt.s32.totalorder %s365_s15, %s365_s15 }
  0x1b   :  { %p276_p11 = scmp.ne.s32.totalorder %s365_s15, %s275_s8  ;;  %p281_p13 = scmp.lt.s32.totalorder %s275_s8, %s275_s8 }
  0x1d   :  { %p282_p0 = por %p281_p13, %p280_p12 }
  0x1f   :  { %p283_p1 = pnand %p282_p0, %p276_p11 }
  0x21   :  { %286 = shalt.err (!%p283_p1)
}
  0x22   :  { %28 = dma.hbm_to_vmem [thread:$0]  %s461_s0, 512, %s365_s15, [#allocation3], %s339_s24, %s339_s24, %s340_s25  }
  0x23   :  { %s341_s10 = smov [#allocation7]   ;;  %s287_s14 = scalar_lea.hbm %s463_s2, 128 }
  0x24   :  { %s58_s11 = sshll.u32 %s341_s10, 4  ;;  %p288_p2 = scmp.ne.s32.totalorder %s463_s2, %s287_s14  ;;  %s59_s11 = int_to_ptr.vmem [resolvable:$true] %s58_s11 }
  0x25   :  { %p291_p3 = scmp.lt.u32.totalorder %s287_s14, %s463_s2 }
  0x27   :  { %p293_p4 = pnand %p291_p3, %p288_p2 }
  0x29   :  { %296 = shalt.err (!%p293_p4)
}
  0x2a   :  { %s297_s20 = scalar_lea.vmem %s59_s11, 128  ;;  %p302_p6 = scmp.lt.s32.totalorder %s59_s11, %s59_s11 }
  0x2b   :  { %p298_p5 = scmp.ne.s32.totalorder %s59_s11, %s297_s20  ;;  %p303_p7 = scmp.lt.s32.totalorder %s297_s20, %s297_s20 }
  0x2d   :  { %p304_p8 = por %p303_p7, %p302_p6 }
  0x2f   :  { %p305_p9 = pnand %p304_p8, %p298_p5 }
  0x31   :  { %308 = shalt.err (!%p305_p9)
}
  0x32   :  { %61 = dma.hbm_to_vmem [thread:$0]  %s463_s2, 128, %s59_s11, [#allocation6]  }
  0x33   :  { %331 = dma.done.wait [#allocation3], 512  }
  0x34   :  { %332 = vsyncadd [#allocation3], 4294966784 }
  0x35   :  { %333 = dma.done.wait [#allocation6], 640  }
  0x36   :  { %334 = vsyncadd [#allocation6], 4294966656  ;;  %v96_v0 = vld [vmem:[#allocation7] sm:$0xff]  ;;  %v99_v2 = vld [vmem:[#allocation2 + $0x8] sm:$0xff]  ;;  %v342_v6 = vmov 0   ;;  %v343_v39 = vmov 0.0  }
  0x37   :  { %v98_v1 = vld [vmem:[#allocation2] sm:$0xff]  ;;  %vm97_vm0 = vnez %v96_v0  ;;  %v100_v3 = vld [vmem:[#allocation2 + $0x10] sm:$0xff]  ;;  %v101_v4 = vld [vmem:[#allocation2 + $0x18] sm:$0xff]  ;;  %s344_s2 = smov [#allocation8]  }
  0x38   :  { %227 = vlog2.f32 %v98_v1  ;;  %v102_v5 = vld [vmem:[#allocation5] sm:$0xff]  ;;  %v126_v7 = vsel %vm97_vm0, 16843009, %v342_v6  ;;  %v103_v8 = vld [vmem:[#allocation5 + $0x8] sm:$0xff]  ;;  %v104_v12 = vld [vmem:[#allocation5 + $0x10] sm:$0xff]  ;;  %s196_s21 = sshll.u32 %s344_s2, 4  ;;  %s197_s21 = int_to_ptr.vmem [resolvable:$true] %s196_s21 }
  0x39   :  { %229 = vlog2.f32 %v99_v2  ;;  %v127_v9 = vunpack.c.0.s8 %v126_v7  ;;  %v128_v10 = vunpack.c.1.s8 %v126_v7  ;;  %v129_v11 = vunpack.c.2.s8 %v126_v7  ;;  %v105_v14 = vld [vmem:[#allocation5 + $0x18] sm:$0xff]  ;;  %s309_s22 = scalar_lea.vmem %s197_s21, 384  ;;  %p314_p11 = scmp.lt.s32.totalorder %s197_s21, %s197_s21 }
  0x3a   :  { %231 = vlog2.f32 %v100_v3  ;;  %v130_v13 = vunpack.c.3.s8 %v126_v7  ;;  %p310_p10 = scmp.ne.s32.totalorder %s197_s21, %s309_s22  ;;  %p315_p12 = scmp.lt.s32.totalorder %s309_s22, %s309_s22 }
  0x3b   :  { %233 = vlog2.f32 %v101_v4  ;;  %v131_v15 = vpack.c.b16 %v127_v9, %v127_v9  ;;  %v133_v16 = vpack.c.b16 %v128_v10, %v128_v10  ;;  %v135_v17 = vpack.c.b16 %v129_v11, %v129_v11 }
  0x3c   :  { %235 = vlog2.f32 %v102_v5  ;;  %v137_v18 = vpack.c.b16 %v130_v13, %v130_v13  ;;  %p316_p13 = por %p315_p12, %p314_p11 }
  0x3d   :  { %237 = vlog2.f32 %v103_v8  ;;  %v132_v19 = vpack.c.b8 %v131_v15, %v131_v15  ;;  %v134_v20 = vpack.c.b8 %v133_v16, %v133_v16  ;;  %v136_v21 = vpack.c.b8 %v135_v17, %v135_v17 }
  0x3e   :  { %239 = vlog2.f32 %v104_v12  ;;  %v138_v22 = vpack.c.b8 %v137_v18, %v137_v18  ;;  %p317_p0 = pnand %p316_p13, %p310_p10 }
  0x3f   :  { %241 = vlog2.f32 %v105_v14  ;;  %vm139_vm1 = vnez %v132_v19  ;;  %vm140_vm2 = vnez %v134_v20  ;;  %vm141_vm3 = vnez %v136_v21 }
  0x40   :  { %vm142_vm4 = vnez %v138_v22  ;;  %v143_v23 = vsel %vm139_vm1, 16843009, %v342_v6  ;;  %v144_v24 = vsel %vm140_vm2, 16843009, %v342_v6  ;;  %v145_v25 = vsel %vm141_vm3, 16843009, %v342_v6 }
  0x41   :  { %v146_v27 = vsel %vm142_vm4, 16843009, %v342_v6  ;;  %v147_v28 = vunpack.c.0.s8 %v143_v23  ;;  %v148_v29 = vunpack.c.0.s8 %v144_v24  ;;  %v149_v30 = vunpack.c.0.s8 %v145_v25 }
  0x42   :  { %v228_v26 = vpop.eup %227  ;;  %v150_v32 = vunpack.c.0.s8 %v146_v27 }
  0x43   :  { %v230_v31 = vpop.eup %229  ;;  %vm414_vm5 = vcmp.ne.s32.totalorder %v147_v28, 0  ;;  %vm418_vm6 = vcmp.ne.s32.totalorder %v148_v29, 0  ;;  %v107_v37 = vmul.f32 0.6931472, %v228_v26  ;;  %vm422_vm7 = vcmp.ne.s32.totalorder %v149_v30, 0 }
  0x44   :  { %v232_v33 = vpop.eup %231  ;;  %v215_v40 = vsel %vm414_vm5, 1.0, %v343_v39  ;;  %v216_v41 = vsel %vm418_vm6, 1.0, %v343_v39  ;;  %v109_v43 = vmul.f32 0.6931472, %v230_v31  ;;  %vm430_vm8 = vcmp.ne.s32.totalorder %v150_v32, 0 }
  0x45   :  { %v234_v36 = vpop.eup %233  ;;  %v217_v45 = vsel %vm422_vm7, 1.0, %v343_v39  ;;  %v186_v46 = vadd.f32 %v216_v41, %v215_v40  ;;  %v111_v48 = vmul.f32 0.6931472, %v232_v33  ;;  %v218_v50 = vsel %vm430_vm8, 1.0, %v343_v39 }
  0x46   :  { %v236_v42 = vpop.eup %235  ;;  %v113_v52 = vmul.f32 0.6931472, %v234_v36 }
  0x47   :  { %v238_v47 = vpop.eup %237  ;;  %v115_v49 = vmul.f32 0.6931472, %v236_v42  ;;  %v187_v54 = vadd.f32 %v217_v45, %v186_v46 }
  0x48   :  { %v240_v51 = vpop.eup %239  ;;  %v117_v53 = vmul.f32 0.6931472, %v238_v47 }
  0x49   :  { %v242_v55 = vpop.eup %241  ;;  %v119_v56 = vmul.f32 0.6931472, %v240_v51  ;;  %v122_v57 = vsub.f32 %v107_v37, %v115_v49  ;;  %v188_v60 = vadd.f32 %v218_v50, %v187_v54 }
  0x4a   :  { %v121_v58 = vmul.f32 0.6931472, %v242_v55  ;;  %v123_v59 = vsub.f32 %v109_v43, %v117_v53 }
  0x4b   :  { %v124_v61 = vsub.f32 %v111_v48, %v119_v56  ;;  %v155_v62 = vsel %vm414_vm5, %v122_v57, 0.0  ;;  %190 = vst [vmem:[#allocation8 + $0x10] sm:$0xff] %v188_v60 }
  0x4c   :  { %v125_v63 = vsub.f32 %v113_v52, %v121_v58  ;;  %v156_v0 = vsel %vm418_vm6, %v123_v59, 0.0  ;;  %v175_v1 = vmul.f32 %v155_v62, %v155_v62 }
  0x4d   :  { %v157_v2 = vsel %vm422_vm7, %v124_v61, 0.0  ;;  %v168_v3 = vadd.f32 %v156_v0, %v155_v62  ;;  %v176_v4 = vmul.f32 %v156_v0, %v156_v0 }
  0x4e   :  { %v158_v5 = vsel %vm430_vm8, %v125_v63, 0.0  ;;  %v177_v6 = vmul.f32 %v157_v2, %v157_v2 }
  0x4f   :  { %v169_v7 = vadd.f32 %v168_v3, %v157_v2  ;;  %v178_v8 = vmul.f32 %v158_v5, %v158_v5  ;;  %v179_v9 = vadd.f32 %v176_v4, %v175_v1 }
  0x51   :  { %v170_v10 = vadd.f32 %v169_v7, %v158_v5  ;;  %v180_v11 = vadd.f32 %v179_v9, %v177_v6 }
  0x53   :  { %v181_v12 = vadd.f32 %v180_v11, %v178_v8  ;;  %172 = vst [vmem:[#allocation8] sm:$0xff] %v170_v10 }
  0x55   :  { %183 = vst [vmem:[#allocation8 + $0x8] sm:$0xff] %v181_v12 }
  0x56   :  { %320 = shalt.err (!%p317_p0)
}
  0x57   :  { %s321_s27 = scalar_lea.hbm %s464_s3, 384 }
  0x58   :  { %p322_p1 = scmp.ne.s32.totalorder %s464_s3, %s321_s27  ;;  %p325_p2 = scmp.lt.u32.totalorder %s321_s27, %s464_s3 }
  0x5a   :  { %p327_p3 = pnand %p325_p2, %p322_p1 }
  0x5c   :  { %330 = shalt.err (!%p327_p3)
}
  0x5d   :  { %202 = dma.vmem_to_hbm [thread:$0]  %s197_s21, 384, %s464_s3, [#allocation4], %s339_s24, %s339_s24, %s340_s25  }
  0x5e   :  { %335 = dma.done.wait [#allocation4], 384  }
  0x5f   :  { %336 = vsyncadd [#allocation4], 4294966912 }
  0x60   :  { %206 = vsyncpa [#allocation3], 1 }
  0x61   :  { %207 = vsyncpa [#allocation6], 1 }
  0x62   :  { %208 = vsyncpa [#allocation4], 1 }

</bundles_post_ra>
